<compile_context>
chip_gen: v7x
topology: tpu7x:2x2x1
jax: 0.10.0
libtpu: 0.0.40
codegen_flags: <defaults>
</compile_context>

<pallas_src>
import functools

import jax
import jax.numpy as jnp
from jax.experimental import pallas as pl
from jax.experimental.pallas import tpu as pltpu


def _head_kernel(gaT_ref, gbT_ref, consts_ref, rc_ref, sgn_ref, out_ref,
                 *, n_edges):
    # gaT_ref/gbT_ref : [nhid, n_pad]   per-node projections (transposed),
    #                                   gaT already includes b1.  compute dtype.
    # consts_ref      : [nhid, 3] f32   col0 = PReLU alpha, col1 = w2[:,1]-w2[:,0],
    #                                   col2[0] = b2[1]-b2[0]
    # rc_ref          : [2, TE] int32   row indices (row 0) / col indices (row 1)
    # sgn_ref         : [1, TE] f32     sign = 1 - 2*patch_label
    # out_ref         : [8, 128] f32    broadcast-filled with this tile's loss sum
    n_pad = gaT_ref.shape[1]
    tile_e = rc_ref.shape[1]
    cdtype = gaT_ref.dtype

    # One-hot gather matrices, lane-dense: node id along sublanes, edge along lanes.
    node_iota = jax.lax.broadcasted_iota(jnp.int32, (n_pad, tile_e), 0)
    oh_row = (node_iota == rc_ref[0:1, :]).astype(cdtype)     # [n_pad, TE]
    oh_col = (node_iota == rc_ref[1:2, :]).astype(cdtype)     # [n_pad, TE]

    # Gather-by-matmul of the pre-projected node tables (Linear-1 hoisted):
    #   h^T = (f @ W1[:nhid] + b1)[row]^T + (f @ W1[nhid:])[col]^T
    hT = (jnp.dot(gaT_ref[...], oh_row, preferred_element_type=jnp.float32)
          + jnp.dot(gbT_ref[...], oh_col, preferred_element_type=jnp.float32))

    alpha_c = consts_ref[:, 0:1]        # [nhid, 1]
    w2d_c = consts_ref[:, 1:2]          # [nhid, 1]
    b2d = consts_ref[0:1, 2:3]          # [1, 1]

    # PReLU with per-channel alpha (broadcast along the lane/edge axis).
    hT = jnp.where(hT > 0.0, hT, alpha_c * hT)

    # Binary logit margin d = z1 - z0: VPU mul + sublane reduce, lane-dense result.
    d = jnp.sum(hT * w2d_c, axis=0, keepdims=True) + b2d      # [1, TE]

    # 2-class cross entropy: loss = softplus(sign * d), numerically stable form.
    z = sgn_ref[...] * d
    loss = jnp.maximum(z, 0.0) + jnp.log(1.0 + jnp.exp(-jnp.abs(z)))

    # Mask tile padding beyond the true edge count (static, closed over).
    e0 = pl.program_id(0) * tile_e
    lane = jax.lax.broadcasted_iota(jnp.int32, (1, tile_e), 1)
    valid = ((e0 + lane) < n_edges).astype(jnp.float32)

    partial = jnp.sum(loss * valid)
    out_ref[...] = jnp.broadcast_to(partial, out_ref.shape).astype(out_ref.dtype)


@functools.partial(jax.jit, static_argnames=("tile_e", "compute_dtype"))
def _head_loss(feature, row, col, label, params, *, tile_e, compute_dtype):
    w1, b1, alpha, w2, b2 = (params["w1"], params["b1"], params["alpha"],
                             params["w2"], params["b2"])
    nhid = w1.shape[1]
    feature = feature.reshape(-1, nhid).astype(jnp.float32)
    n_nodes = feature.shape[0]

    # ---- Hoisted Linear-1: per-node projections, computed once in f32. ----
    ga = feature @ w1[:nhid].astype(jnp.float32) + b1.astype(jnp.float32)
    gb = feature @ w1[nhid:].astype(jnp.float32)
    n_pad = -(-max(n_nodes, 1) // 128) * 128          # lane-dense node axis
    gaT = jnp.pad(ga.T, ((0, 0), (0, n_pad - n_nodes))).astype(compute_dtype)
    gbT = jnp.pad(gb.T, ((0, 0), (0, n_pad - n_nodes))).astype(compute_dtype)

    # ---- Per-edge scalars (sign of the 2-class CE) and indices. ----
    E = row.shape[0]
    num_tiles = max(1, -(-E // tile_e))               # cdiv; >= 2 tiles feeds both v7x TCs
    e_pad = num_tiles * tile_e
    pad = e_pad - E

    patch_label = (label[row] == label[col]).astype(jnp.float32)
    sgn = jnp.pad(1.0 - 2.0 * patch_label, (0, pad),
                  constant_values=1.0).reshape(1, e_pad)                # [1, e_pad] f32
    rc = jnp.stack([jnp.pad(row.astype(jnp.int32), (0, pad)),
                    jnp.pad(col.astype(jnp.int32), (0, pad))], axis=0)  # [2, e_pad] i32

    # ---- Small merged constant block: alpha | (w2[:,1]-w2[:,0]) | b2 delta. ----
    w2d = (w2[:, 1] - w2[:, 0]).astype(jnp.float32)
    b2d = (b2[1] - b2[0]).astype(jnp.float32)
    consts = jnp.stack([alpha.astype(jnp.float32), w2d,
                        jnp.zeros((nhid,), jnp.float32).at[0].set(b2d)], axis=1)

    partials = pl.pallas_call(
        functools.partial(_head_kernel, n_edges=E),
        out_shape=jax.ShapeDtypeStruct((num_tiles * 8, 128), jnp.float32),
        grid_spec=pltpu.PrefetchScalarGridSpec(
            num_scalar_prefetch=0,
            grid=(num_tiles,),
            in_specs=[
                pl.BlockSpec((nhid, n_pad), lambda i: (0, 0)),   # gaT (VMEM-resident)
                pl.BlockSpec((nhid, n_pad), lambda i: (0, 0)),   # gbT (VMEM-resident)
                pl.BlockSpec((nhid, 3), lambda i: (0, 0)),       # merged constants
                pl.BlockSpec((2, tile_e), lambda i: (0, i)),     # row/col indices
                pl.BlockSpec((1, tile_e), lambda i: (0, i)),     # CE sign
            ],
            out_specs=pl.BlockSpec((8, 128), lambda i: (i, 0)),
        ),
        compiler_params=pltpu.CompilerParams(
            dimension_semantics=("parallel",)),
    )(gaT, gbT, consts, rc, sgn)

    # One meaningful value per tile (each (8,128) block is broadcast-filled).
    total = jnp.sum(partials[0::8, 0])
    return total / float(max(E, 1))                   # CrossEntropyLoss mean; no div-by-0


def head_forward(feature, adj_indices, label, params, select_id=None,
                 *, tile_e=1024, compute_dtype=jnp.bfloat16):
    """JAX/Pallas equivalent of HEAD.forward.

    feature:      any shape flattenable to [-1, nhid]
    adj_indices:  [2, inst] int32 (equivalent of adj._indices())
    label:        [N] int32 node labels
    params:       dict with w1 (2*nhid, nhid), b1 (nhid,), alpha (nhid,),
                  w2 (nhid, 2), b2 (2,)  -- weights already transposed (in, out)
    tile_e:       edges per grid step.  Sweep 1024-8192 on v5e/v6e; on v7x keep
                  num_tiles >= 2 (both TensorCores) and mind its 64 MiB VMEM.
    """
    if select_id is None:
        row = adj_indices[0, :]
        col = adj_indices[1, :]
    else:
        row = adj_indices[0, select_id]
        col = adj_indices[1, select_id]
    return _head_loss(feature, row, col, label, params,
                      tile_e=tile_e, compute_dtype=compute_dtype)


def _reference_forward(feature, adj_indices, label, params, select_id=None):
    """Pure-JAX f32 reference for correctness checking."""
    nhid = params["w1"].shape[1]
    feature = feature.reshape(-1, nhid)
    if select_id is None:
        row, col = adj_indices[0, :], adj_indices[1, :]
    else:
        row, col = adj_indices[0, select_id], adj_indices[1, select_id]
    patch_label = (label[row] == label[col]).astype(jnp.int32)
    x = jnp.concatenate([feature[row], feature[col]], axis=1)
    h = x @ params["w1"] + params["b1"]
    h = jnp.where(h > 0, h, params["alpha"] * h)
    logits = h @ params["w2"] + params["b2"]
    logp = jax.nn.log_softmax(logits, axis=-1)
    nll = -jnp.take_along_axis(logp, patch_label[:, None], axis=-1)
    return jnp.mean(nll)


if __name__ == "__main__":
    nhid = 32        # hidden size of HEAD
    n_nodes = 64     # number of graph nodes
    n_edges = 2000   # number of sparse-adj entries (deliberately not tile-aligned)
    n_classes = 3    # node-label vocabulary
    tile_e = 512     # small tile for the demo -> multiple tiles + padded last tile

    key = jax.random.PRNGKey(0)
    k_feat, k_row, k_col, k_lbl, k_w1, k_b1, k_w2, k_b2 = jax.random.split(key, 8)

    feature = jax.random.normal(k_feat, (n_nodes, nhid), dtype=jnp.float32)
    adj_indices = jnp.stack([
        jax.random.randint(k_row, (n_edges,), 0, n_nodes),
        jax.random.randint(k_col, (n_edges,), 0, n_nodes),
    ]).astype(jnp.int32)
    label = jax.random.randint(k_lbl, (n_nodes,), 0, n_classes).astype(jnp.int32)

    # Deterministic parameter init (shapes from nn.Linear / nn.PReLU).
    # Weights stored transposed to (in, out) for the x @ W convention.
    params = {
        "w1": (jax.random.normal(k_w1, (2 * nhid, nhid), jnp.float32)
               * (1.0 / jnp.sqrt(2.0 * nhid))),
        "b1": jax.random.normal(k_b1, (nhid,), jnp.float32) * 0.01,
        "alpha": jnp.full((nhid,), 0.25, jnp.float32),   # nn.PReLU default init
        "w2": (jax.random.normal(k_w2, (nhid, 2), jnp.float32)
               * (1.0 / jnp.sqrt(nhid))),
        "b2": jax.random.normal(k_b2, (2,), jnp.float32) * 0.01,
    }

    ref = _reference_forward(feature, adj_indices, label, params)

    # f32 path: tight check against the pure-JAX reference.
    loss_f32 = head_forward(feature, adj_indices, label, params,
                            select_id=None, tile_e=tile_e,
                            compute_dtype=jnp.float32)
    loss_f32 = jax.block_until_ready(loss_f32)
    assert jnp.allclose(loss_f32, ref, rtol=1e-4, atol=1e-4), (loss_f32, ref)

    # bf16 node tables (gather is exact 0/1 selection; only table rounding): looser tol.
    loss_bf16 = head_forward(feature, adj_indices, label, params,
                             select_id=None, tile_e=tile_e,
                             compute_dtype=jnp.bfloat16)
    loss_bf16 = jax.block_until_ready(loss_bf16)
    assert jnp.allclose(loss_bf16, ref, rtol=3e-2, atol=3e-2), (loss_bf16, ref)

    # select_id path with a ragged (non tile-aligned) edge subset.
    select_id = jnp.arange(0, n_edges, 3, dtype=jnp.int32)
    loss_sel = head_forward(feature, adj_indices, label, params,
                            select_id=select_id, tile_e=tile_e,
                            compute_dtype=jnp.float32)
    loss_sel = jax.block_until_ready(loss_sel)
    ref_sel = _reference_forward(feature, adj_indices, label, params, select_id)
    assert jnp.allclose(loss_sel, ref_sel, rtol=1e-4, atol=1e-4), (loss_sel, ref_sel)

    print("KERNEL_OK")
</pallas_src>

<mosaic_0001>
module attributes {stable_mosaic.version = 11 : i64} {
  func.func @_head_kernel(%arg0: i32, %arg1: memref<32x128xf32, #tpu.memory_space<vmem>>, %arg2: memref<32x128xf32, #tpu.memory_space<vmem>>, %arg3: memref<32x3xf32, #tpu.memory_space<vmem>>, %arg4: memref<2x512xi32, #tpu.memory_space<vmem>>, %arg5: memref<1x512xf32, #tpu.memory_space<vmem>>, %arg6: memref<8x128xf32, #tpu.memory_space<vmem>>) attributes {dimension_semantics = [#tpu.dimension_semantics<parallel>], iteration_bounds = array<i64: 4>, scalar_prefetch = 0 : i64, scratch_operands = 0 : i64, tpu.core_type = #tpu.core_type<tc>, window_params = [{pipeline_mode = #tpu.pipeline_mode<synchronous>, transform_indices = @transform_0, window_bounds = array<i64: 32, 128>}, {pipeline_mode = #tpu.pipeline_mode<synchronous>, transform_indices = @transform_1, window_bounds = array<i64: 32, 128>}, {pipeline_mode = #tpu.pipeline_mode<synchronous>, transform_indices = @transform_2, window_bounds = array<i64: 32, 3>}, {transform_indices = @transform_3, window_bounds = array<i64: 2, 512>}, {transform_indices = @transform_4, window_bounds = array<i64: 1, 512>}, {transform_indices = @transform_5, window_bounds = array<i64: 8, 128>}]} {
    %0 = tpu.iota {dimensions = array<i32: 0>} : vector<128x512xi32>
    %c0 = arith.constant 0 : index
    %c0_0 = arith.constant 0 : index
    %1 = vector.load %arg4[%c0, %c0_0] : memref<2x512xi32, #tpu.memory_space<vmem>>, vector<1x512xi32>
    %2 = vector.broadcast %1 : vector<1x512xi32> to vector<128x512xi32>
    %3 = arith.cmpi eq, %0, %2 : vector<128x512xi32>
    %4 = arith.extui %3 : vector<128x512xi1> to vector<128x512xi32>
    %5 = arith.sitofp %4 : vector<128x512xi32> to vector<128x512xf32>
    %c1 = arith.constant 1 : index
    %c0_1 = arith.constant 0 : index
    %6 = vector.load %arg4[%c1, %c0_1] : memref<2x512xi32, #tpu.memory_space<vmem>>, vector<1x512xi32>
    %7 = vector.broadcast %6 : vector<1x512xi32> to vector<128x512xi32>
    %8 = arith.cmpi eq, %0, %7 : vector<128x512xi32>
    %9 = arith.extui %8 : vector<128x512xi1> to vector<128x512xi32>
    %10 = arith.sitofp %9 : vector<128x512xi32> to vector<128x512xf32>
    %c0_2 = arith.constant 0 : index
    %c0_3 = arith.constant 0 : index
    %11 = vector.load %arg1[%c0_2, %c0_3] : memref<32x128xf32, #tpu.memory_space<vmem>>, vector<32x128xf32>
    %cst = arith.constant dense<0.000000e+00> : vector<32x512xf32>
    %12 = tpu.matmul %11, %5, %cst {dimension_numbers = #tpu.dot_dimension_numbers<[1], [0], [0], [1], [0, 0, 1, 1], [], []>} : vector<32x128xf32>, vector<128x512xf32>, vector<32x512xf32> -> vector<32x512xf32>
    %c0_4 = arith.constant 0 : index
    %c0_5 = arith.constant 0 : index
    %13 = vector.load %arg2[%c0_4, %c0_5] : memref<32x128xf32, #tpu.memory_space<vmem>>, vector<32x128xf32>
    %cst_6 = arith.constant dense<0.000000e+00> : vector<32x512xf32>
    %14 = tpu.matmul %13, %10, %cst_6 {dimension_numbers = #tpu.dot_dimension_numbers<[1], [0], [0], [1], [0, 0, 1, 1], [], []>} : vector<32x128xf32>, vector<128x512xf32>, vector<32x512xf32> -> vector<32x512xf32>
    %15 = arith.addf %12, %14 : vector<32x512xf32>
    %c0_7 = arith.constant 0 : index
    %c0_8 = arith.constant 0 : index
    %16 = vector.load %arg3[%c0_7, %c0_8] : memref<32x3xf32, #tpu.memory_space<vmem>>, vector<32x1xf32>
    %c0_9 = arith.constant 0 : index
    %c1_10 = arith.constant 1 : index
    %17 = vector.load %arg3[%c0_9, %c1_10] : memref<32x3xf32, #tpu.memory_space<vmem>>, vector<32x1xf32>
    %c0_11 = arith.constant 0 : index
    %c2 = arith.constant 2 : index
    %18 = vector.load %arg3[%c0_11, %c2] : memref<32x3xf32, #tpu.memory_space<vmem>>, vector<1x1xf32>
    %cst_12 = arith.constant 0.000000e+00 : f32
    %19 = vector.broadcast %cst_12 : f32 to vector<32x512xf32>
    %20 = arith.cmpf ogt, %15, %19 : vector<32x512xf32>
    %21 = vector.broadcast %16 : vector<32x1xf32> to vector<32x512xf32>
    %22 = arith.mulf %21, %15 : vector<32x512xf32>
    %23 = arith.select %20, %15, %22 : vector<32x512xi1>, vector<32x512xf32>
    %24 = vector.broadcast %17 : vector<32x1xf32> to vector<32x512xf32>
    %25 = arith.mulf %23, %24 : vector<32x512xf32>
    %cst_13 = arith.constant dense<0.000000e+00> : vector<512xf32>
    %26 = vector.multi_reduction <add>, %25, %cst_13 [0] : vector<32x512xf32> to vector<512xf32>
    %27 = vector.shape_cast %26 : vector<512xf32> to vector<1x512xf32>
    %28 = vector.broadcast %18 : vector<1x1xf32> to vector<1x512xf32>
    %29 = arith.addf %27, %28 : vector<1x512xf32>
    %c0_14 = arith.constant 0 : index
    %c0_15 = arith.constant 0 : index
    %30 = vector.load %arg5[%c0_14, %c0_15] : memref<1x512xf32, #tpu.memory_space<vmem>>, vector<1x512xf32>
    %31 = arith.mulf %30, %29 : vector<1x512xf32>
    %cst_16 = arith.constant 0.000000e+00 : f32
    %32 = vector.broadcast %cst_16 : f32 to vector<1x512xf32>
    %33 = arith.maximumf %31, %32 : vector<1x512xf32>
    %34 = math.absf %31 : vector<1x512xf32>
    %cst_17 = arith.constant 0.000000e+00 : f32
    %35 = vector.broadcast %cst_17 : f32 to vector<1x512xf32>
    %36 = arith.subf %35, %34 : vector<1x512xf32>
    %37 = math.exp %36 : vector<1x512xf32>
    %cst_18 = arith.constant 1.000000e+00 : f32
    %38 = vector.broadcast %cst_18 : f32 to vector<1x512xf32>
    %39 = arith.addf %38, %37 : vector<1x512xf32>
    %40 = math.log %39 : vector<1x512xf32>
    %41 = arith.addf %33, %40 : vector<1x512xf32>
    %c512_i32 = arith.constant 512 : i32
    %42 = arith.muli %arg0, %c512_i32 : i32
    %43 = tpu.iota {dimensions = array<i32: 1>} : vector<1x512xi32>
    %44 = vector.broadcast %42 : i32 to vector<1x512xi32>
    %45 = arith.addi %44, %43 : vector<1x512xi32>
    %c2000_i32 = arith.constant 2000 : i32
    %46 = vector.broadcast %c2000_i32 : i32 to vector<1x512xi32>
    %47 = arith.cmpi slt, %45, %46 : vector<1x512xi32>
    %48 = arith.extui %47 : vector<1x512xi1> to vector<1x512xi32>
    %49 = arith.sitofp %48 : vector<1x512xi32> to vector<1x512xf32>
    %50 = arith.mulf %41, %49 : vector<1x512xf32>
    %51 = vector.shape_cast %50 : vector<1x512xf32> to vector<1x1x512xf32>
    %cst_19 = arith.constant dense<0.000000e+00> : vector<1xf32>
    %52 = vector.multi_reduction <add>, %51, %cst_19 [1, 2] : vector<1x1x512xf32> to vector<1xf32>
    %53 = vector.shape_cast %52 : vector<1xf32> to vector<1x1x1xf32>
    %54 = vector.extract %53[0, 0, 0] : f32 from vector<1x1x1xf32>
    %55 = vector.broadcast %54 : f32 to vector<8x128xf32>
    %c0_20 = arith.constant 0 : index
    %c0_21 = arith.constant 0 : index
    %56 = vector.load %arg6[%c0_20, %c0_21] : memref<8x128xf32, #tpu.memory_space<vmem>>, vector<8x128xf32>
    tpu.vector_store %arg6[%c0_20, %c0_21], %55 {strides = array<i32>} : memref<8x128xf32, #tpu.memory_space<vmem>>, vector<8x128xf32>,
    return
  }
  func.func @transform_0(%arg0: i32) -> (i32, i32) {
    %c0_i32 = arith.constant 0 : i32
    %c0_i32_0 = arith.constant 0 : i32
    %c0_i32_1 = arith.constant 0 : i32
    return %c0_i32, %c0_i32_0 : i32, i32
  }
  func.func @transform_1(%arg0: i32) -> (i32, i32) {
    %c0_i32 = arith.constant 0 : i32
    %c0_i32_0 = arith.constant 0 : i32
    %c0_i32_1 = arith.constant 0 : i32
    return %c0_i32, %c0_i32_0 : i32, i32
  }
  func.func @transform_2(%arg0: i32) -> (i32, i32) {
    %c0_i32 = arith.constant 0 : i32
    %c0_i32_0 = arith.constant 0 : i32
    %c0_i32_1 = arith.constant 0 : i32
    return %c0_i32, %c0_i32_0 : i32, i32
  }
  func.func @transform_3(%arg0: i32) -> (i32, i32) {
    %c0_i32 = arith.constant 0 : i32
    %c0_i32_0 = arith.constant 0 : i32
    return %c0_i32, %arg0 : i32, i32
  }
  func.func @transform_4(%arg0: i32) -> (i32, i32) {
    %c0_i32 = arith.constant 0 : i32
    %c0_i32_0 = arith.constant 0 : i32
    return %c0_i32, %arg0 : i32, i32
  }
  func.func @transform_5(%arg0: i32) -> (i32, i32) {
    %c0_i32 = arith.constant 0 : i32
    %c0_i32_0 = arith.constant 0 : i32
    return %arg0, %c0_i32 : i32, i32
  }
}

</mosaic_0001>

<bundles_post_ra>
// kernel: _head_loss.1
= control target key start
LH: loop header
LB: loop body
LE: loop exit
PB: predicated region body
PF: predicated region fallthrough
CT: control target
= control target key end

     0   :  { %s1878_s18 = smov 0   ;;  %s2444_s0 = inlined_call_operand.vmem [shape: f32[32,128], index: 0, kind: input, shape index: {}]   ;;  %s2445_s1 = inlined_call_operand.vmem [shape: f32[32,128], index: 1, kind: input, shape index: {}]   ;;  %s2446_s2 = inlined_call_operand.vmem [shape: f32[32,3], index: 2, kind: input, shape index: {}]   ;;  %s2447_s3 = inlined_call_operand.vmem [shape: s32[2,2048], index: 3, kind: input, shape index: {}]   ;;  %s2448_s4 = inlined_call_operand.vmem [shape: f32[1,2048], index: 4, kind: input, shape index: {}]   ;;  %s2449_s5 = inlined_call_operand.vmem [shape: f32[32,128], index: 5, kind: output, shape index: {}]  }
   0x1 LB: > { %s1884_s19 = sadd.s32 4294967295, %s1840_s18   ;;  %p1393_p0 = scmp.ge.s32.totalorder %s1840_s18, 1  ;;  %s1840_s18 = sphi %s1878_s18, %s15_s18  }
   0x2   : > { %p198_p1 = scmp.lt.s32.totalorder %s1840_s18, 5 }
   0x4   : > { %p199_p2 = pnand %p1393_p0, %p198_p1 }
   0x5   : > { %s1394_s20 = sshll.u32 (!%p199_p2), %s1884_s19, 2  ;;  %v244_v0 = vlaneseq (!%p199_p2)  ;;  %v1842_v1 = vmov (!%p199_p2), 0.0   ;;  %v1843_v3 = vmov (!%p199_p2), 0   ;;  %v1901_v4 = vld [vmem:[%s2446_s2 + $0x10] sm:$0xff] (!%p199_p2)  ;;  %v1044_v5 = vld [vmem:[%s2446_s2] sm:$0xff] (!%p199_p2)  ;;  %v1931_v11 = vld [vmem:[%s2446_s2 + $0x8] sm:$0xff] (!%p199_p2) }
   0x6   : > { %202 = sbr.rel (%p199_p2) target bundleno = 597 (0x255), region = 40  ;;  %p230_p3 = scmp.lt.s32.totalorder (!%p199_p2), %s1394_s20, 15  ;;  %752 = vmatprep.mubr.f32.mxu0 (!%p199_p2), %v1842_v1  ;;  %841 = vmatprep.mubr.f32.mxu1 (!%p199_p2), %v1842_v1  ;;  %v1844_v19 = vmov (!%p199_p2), 1   ;;  %v1845_v20 = vmov (!%p199_p2), 1.0|1.0   ;;  %v2036_v27 = vld [vmem:[%s2446_s2 + $0x18] sm:$0xff] (!%p199_p2) }
   0x7   : > { %v1892_v2 = vshrl.u32 (!%p199_p2), %v244_v0, 7  ;;  %1823 = vset.pattern.permute.xlu1 (!%p199_p2), %v1843_v3  ;;  %1822 = vset.pattern.permute.xlu0 (!%p199_p2), %v1843_v3  ;;  %v684_v39 = vld [vmem:[%s2445_s1] sm:$0xff] (!%p199_p2)  ;;  %v685_v40 = vld [vmem:[%s2445_s1 + $0x8] sm:$0xff] (!%p199_p2)  ;;  %v686_v41 = vld [vmem:[%s2445_s1 + $0x10] sm:$0xff] (!%p199_p2)  ;;  %v1846_v44 = vmov (!%p199_p2), 2   ;;  %s1655_s7 = sshll.u32 (!%p199_p2), %s1884_s19, 9 }
   0x8   : > { %1077 = vperm.xlu1 (!%p199_p2), %1823, %v1901_v4   ;;  %1067 = vperm.xlu0 (!%p199_p2), %1822, %v1044_v5   ;;  %v687_v42 = vld [vmem:[%s2445_s1 + $0x18] sm:$0xff] (!%p199_p2)  ;;  %v1048_v43 = vld [vmem:[%s2446_s2] sm:$0x1] (!%p199_p2)  ;;  %v681_v46 = vld [vmem:[%s2444_s0 + $0x8] sm:$0xff] (!%p199_p2)  ;;  %p240_p4 = scmp.lt.s32.totalorder (!%p199_p2), %s1884_s19, 3 }
   0x9   : > { %v1907_v6 = vsub.s32 (!%p199_p2), 1, %v1892_v2  ;;  %v1910_v7 = vsub.s32 (!%p199_p2), 3, %v1892_v2  ;;  %v1913_v8 = vsub.s32 (!%p199_p2), 0, %v1892_v2  ;;  %v1918_v9 = vsub.s32 (!%p199_p2), 2, %v1892_v2  ;;  %v680_v45 = vld [vmem:[%s2444_s0] sm:$0xff] (!%p199_p2)  ;;  %v682_v47 = vld [vmem:[%s2444_s0 + $0x10] sm:$0xff] (!%p199_p2) }
   0xa   : > { %v1926_v10 = vadd.s32 (!%p199_p2), 8, %v1892_v2  ;;  %v1935_v13 = vadd.s32 (!%p199_p2), 16, %v1892_v2  ;;  %v1938_v14 = vadd.s32 (!%p199_p2), 24, %v1892_v2  ;;  %v1976_v21 = vadd.s32 (!%p199_p2), 32, %v1892_v2  ;;  %v683_v48 = vld [vmem:[%s2444_s0 + $0x18] sm:$0xff] (!%p199_p2) }
   0xb   : > { %v1979_v22 = vadd.s32 (!%p199_p2), 40, %v1892_v2  ;;  %v2002_v23 = vadd.s32 (!%p199_p2), 48, %v1892_v2  ;;  %v2005_v24 = vadd.s32 (!%p199_p2), 56, %v1892_v2  ;;  %v2028_v25 = vadd.s32 (!%p199_p2), 64, %v1892_v2 }
   0xc   : > { %1824 = vset.pattern.permute.xlu1 (!%p199_p2), %v1844_v19  ;;  %1072 = vperm.xlu0 (!%p199_p2), %1822, %v1931_v11   ;;  %v2031_v26 = vadd.s32 (!%p199_p2), 72, %v1892_v2  ;;  %v2064_v28 = vadd.s32 (!%p199_p2), 80, %v1892_v2  ;;  %v2067_v29 = vadd.s32 (!%p199_p2), 88, %v1892_v2  ;;  %v2093_v30 = vadd.s32 (!%p199_p2), 96, %v1892_v2 }
   0xd   : > { %s2451_s20 = smov (!%p230_p3, %s1394_s20), 15  ;;  %1118 = vperm.xlu1 %1824, %v1044_v5   ;;  %v2096_v31 = vadd.s32 104, %v1892_v2  ;;  %v2119_v32 = vadd.s32 112, %v1892_v2  ;;  %v2122_v33 = vadd.s32 120, %v1892_v2  ;;  %s2453_s19 = smov (!%p240_p4, %s1884_s19), 3 }
   0xe   : > { %s1395_s25 = sshll.u32 %s2451_s20, 1  ;;  %s238_s6 = scalar_lea.vmem %s2448_s4, %s2451_s20 }
   0xf   : > { %s1923_s28 = scalar_lea.vmem %s2447_s3, %s1395_s25  ;;  %s1397_s20 = sshll.u32 %s2453_s19, 3 }
  0x10   : > { %v1462_v12 = vld [vmem:[%s1923_s28 + $0x1] ss:$2 sm:$0xf]  ;;  %v261_v34 = vld [vmem:[%s1923_s28] ss:$2 sm:$0xf]  ;;  %1825 = vset.pattern.permute.xlu0 %v1844_v19  ;;  %s243_s10 = scalar_lea.vmem %s2449_s5, %s1397_s20 }
  0x11   : > { %v1941_v15 = vrot.slane %v1462_v12, %v1907_v6  ;;  %v1944_v16 = vrot.slane %v1462_v12, %v1910_v7  ;;  %v1947_v17 = vrot.slane %v1462_v12, %v1913_v8  ;;  %v1950_v18 = vrot.slane %v1462_v12, %v1918_v9  ;;  %1826 = vset.pattern.permute.xlu1 %v1843_v3 }
  0x12   : > { %1082 = vperm.xlu1 %1826, %v2036_v27   ;;  %v2146_v35 = vrot.slane %v261_v34, %v1907_v6  ;;  %v2154_v36 = vrot.slane %v261_v34, %v1910_v7  ;;  %v2162_v37 = vrot.slane %v261_v34, %v1913_v8  ;;  %v2170_v38 = vrot.slane %v261_v34, %v1918_v9 }
  0x13   : > { %vm489_vm0 = vcmp.eq.s32.totalorder %v1892_v2, %v1941_v15  ;;  %vm493_vm1 = vcmp.eq.s32.totalorder %v1926_v10, %v1941_v15  ;;  %vm491_vm2 = vcmp.eq.s32.totalorder %v1892_v2, %v1944_v16  ;;  %vm495_vm3 = vcmp.eq.s32.totalorder %v1926_v10, %v1944_v16  ;;  %1122 = vperm.xlu0 %1825, %v1931_v11  }
  0x14   : > { %vm1662_vm4 = vmpackc.low %vm493_vm1, %vm489_vm0  ;;  %vm488_vm5 = vcmp.eq.s32.totalorder %v1892_v2, %v1947_v17  ;;  %vm492_vm6 = vcmp.eq.s32.totalorder %v1926_v10, %v1947_v17  ;;  %vm490_vm7 = vcmp.eq.s32.totalorder %v1892_v2, %v1950_v18  ;;  %vm494_vm8 = vcmp.eq.s32.totalorder %v1926_v10, %v1950_v18 }
  0x15   : > { %1663 = vmatprep.subr.msk.bf16.mxu0 %vm1662_vm4, %v1845_v20  ;;  %vm1694_vm9 = vmpackc.low %vm495_vm3, %vm491_vm2  ;;  %vm497_vm10 = vcmp.eq.s32.totalorder %v1935_v13, %v1941_v15  ;;  %vm501_vm11 = vcmp.eq.s32.totalorder %v1938_v14, %v1941_v15  ;;  %vm499_vm13 = vcmp.eq.s32.totalorder %v1935_v13, %v1944_v16  ;;  %vm503_vm14 = vcmp.eq.s32.totalorder %v1938_v14, %v1944_v16 }
  0x16   : > { %1695 = vmatprep.subr.msk.bf16.mxu1 %vm1694_vm9, %v1845_v20  ;;  %vm1664_vm12 = vmpackc.low %vm492_vm6, %vm488_vm5  ;;  %vm496_vm0 = vcmp.eq.s32.totalorder %v1935_v13, %v1947_v17  ;;  %vm500_vm1 = vcmp.eq.s32.totalorder %v1938_v14, %v1947_v17  ;;  %vm498_vm3 = vcmp.eq.s32.totalorder %v1935_v13, %v1950_v18  ;;  %vm502_vm4 = vcmp.eq.s32.totalorder %v1938_v14, %v1950_v18 }
  0x17   : > { %1665 = vmatpush1.bf16.msk.msra.mxu0 %vm1664_vm12, %v1845_v20  ;;  %vm1696_vm15 = vmpackc.low %vm494_vm8, %vm490_vm7  ;;  %vm505_vm6 = vcmp.eq.s32.totalorder %v1976_v21, %v1941_v15  ;;  %vm509_vm7 = vcmp.eq.s32.totalorder %v1979_v22, %v1941_v15  ;;  %vm507_vm9 = vcmp.eq.s32.totalorder %v1976_v21, %v1944_v16  ;;  %vm504_vm12 = vcmp.eq.s32.totalorder %v1976_v21, %v1947_v17 }
  0x18   : > { %1697 = vmatpush1.bf16.msk.msra.mxu1 %vm1696_vm15, %v1845_v20  ;;  %vm1666_vm2 = vmpackc.low %vm501_vm11, %vm497_vm10  ;;  %vm511_vm10 = vcmp.eq.s32.totalorder %v1979_v22, %v1944_v16  ;;  %vm506_vm15 = vcmp.eq.s32.totalorder %v1976_v21, %v1950_v18  ;;  %1827 = vset.pattern.permute.xlu1 %v1844_v19 }
  0x19   : > { %1667 = vmatprep.subr.msk.bf16.mxu0 %vm1666_vm2, %v1845_v20  ;;  %vm1698_vm5 = vmpackc.low %vm503_vm14, %vm499_vm13  ;;  %vm508_vm13 = vcmp.eq.s32.totalorder %v1979_v22, %v1947_v17  ;;  %vm513_vm2 = vcmp.eq.s32.totalorder %v2002_v23, %v1941_v15  ;;  %1126 = vperm.xlu1 %1827, %v1901_v4  }
  0x1a   : > { %1699 = vmatprep.subr.msk.bf16.mxu1 %vm1698_vm5, %v1845_v20  ;;  %vm1668_vm8 = vmpackc.low %vm500_vm1, %vm496_vm0  ;;  %vm510_vm0 = vcmp.eq.s32.totalorder %v1979_v22, %v1950_v18  ;;  %vm515_vm5 = vcmp.eq.s32.totalorder %v2002_v23, %v1944_v16  ;;  %1130 = vperm.xlu0 %1825, %v2036_v27  }
  0x1b   : > { %1669 = vmatpush1.bf16.msk.msra.mxu0 %vm1668_vm8, %v1845_v20  ;;  %vm1700_vm11 = vmpackc.low %vm502_vm4, %vm498_vm3  ;;  %vm517_vm3 = vcmp.eq.s32.totalorder %v2005_v24, %v1941_v15  ;;  %vm512_vm8 = vcmp.eq.s32.totalorder %v2002_v23, %v1947_v17 }
  0x1c   : > { %1701 = vmatpush1.bf16.msk.msra.mxu1 %vm1700_vm11, %v1845_v20  ;;  %vm1670_vm14 = vmpackc.low %vm509_vm7, %vm505_vm6  ;;  %vm519_vm6 = vcmp.eq.s32.totalorder %v2005_v24, %v1944_v16  ;;  %vm514_vm11 = vcmp.eq.s32.totalorder %v2002_v23, %v1950_v18 }
  0x1d   : > { %1671 = vmatprep.subr.msk.bf16.mxu0 %vm1670_vm14, %v1845_v20  ;;  %vm1702_vm1 = vmpackc.low %vm511_vm10, %vm507_vm9  ;;  %vm516_vm9 = vcmp.eq.s32.totalorder %v2005_v24, %v1947_v17  ;;  %vm521_vm14 = vcmp.eq.s32.totalorder %v2028_v25, %v1941_v15  ;;  %1828 = vset.pattern.permute.xlu1 %v1846_v44 }
  0x1e   : > { %1703 = vmatprep.subr.msk.bf16.mxu1 %vm1702_vm1, %v1845_v20  ;;  %vm1672_vm4 = vmpackc.low %vm508_vm13, %vm504_vm12  ;;  %vm518_vm12 = vcmp.eq.s32.totalorder %v2005_v24, %v1950_v18  ;;  %vm523_vm1 = vcmp.eq.s32.totalorder %v2028_v25, %v1944_v16  ;;  %1187 = vperm.xlu1 %1828, %v1048_v43  }
  0x1f   : > { %1673 = vmatpush1.bf16.msk.msra.mxu0 %vm1672_vm4, %v1845_v20  ;;  %vm1704_vm7 = vmpackc.low %vm510_vm0, %vm506_vm15  ;;  %vm525_vm15 = vcmp.eq.s32.totalorder %v2031_v26, %v1941_v15  ;;  %vm520_vm4 = vcmp.eq.s32.totalorder %v2028_v25, %v1947_v17  ;;  %1829 = vset.pattern.permute.xlu0 %v1846_v44 }
  0x20   : > { %1705 = vmatpush1.bf16.msk.msra.mxu1 %vm1704_vm7, %v1845_v20  ;;  %vm1674_vm10 = vmpackc.low %vm517_vm3, %vm513_vm2  ;;  %vm527_vm2 = vcmp.eq.s32.totalorder %v2031_v26, %v1944_v16  ;;  %vm522_vm7 = vcmp.eq.s32.totalorder %v2028_v25, %v1950_v18 }
  0x21   : > { %1675 = vmatprep.subr.msk.bf16.mxu0 %vm1674_vm10, %v1845_v20  ;;  %vm1706_vm13 = vmpackc.low %vm519_vm6, %vm515_vm5  ;;  %vm524_vm5 = vcmp.eq.s32.totalorder %v2031_v26, %v1947_v17  ;;  %vm529_vm10 = vcmp.eq.s32.totalorder %v2064_v28, %v1941_v15 }
  0x22   : > { %1707 = vmatprep.subr.msk.bf16.mxu1 %vm1706_vm13, %v1845_v20  ;;  %vm1676_vm0 = vmpackc.low %vm516_vm9, %vm512_vm8  ;;  %vm526_vm8 = vcmp.eq.s32.totalorder %v2031_v26, %v1950_v18  ;;  %vm531_vm13 = vcmp.eq.s32.totalorder %v2064_v28, %v1944_v16 }
  0x23   : > { %1677 = vmatpush1.bf16.msk.msra.mxu0 %vm1676_vm0, %v1845_v20  ;;  %vm1708_vm3 = vmpackc.low %vm518_vm12, %vm514_vm11  ;;  %vm533_vm11 = vcmp.eq.s32.totalorder %v2067_v29, %v1941_v15  ;;  %vm528_vm0 = vcmp.eq.s32.totalorder %v2064_v28, %v1947_v17 }
  0x24   : > { %1709 = vmatpush1.bf16.msk.msra.mxu1 %vm1708_vm3, %v1845_v20  ;;  %vm1678_vm6 = vmpackc.low %vm525_vm15, %vm521_vm14  ;;  %vm535_vm14 = vcmp.eq.s32.totalorder %v2067_v29, %v1944_v16  ;;  %vm530_vm3 = vcmp.eq.s32.totalorder %v2064_v28, %v1950_v18 }
  0x25   : > { %1679 = vmatprep.subr.msk.bf16.mxu0 %vm1678_vm6, %v1845_v20  ;;  %vm1710_vm9 = vmpackc.low %vm527_vm2, %vm523_vm1  ;;  %vm532_vm1 = vcmp.eq.s32.totalorder %v2067_v29, %v1947_v17  ;;  %vm537_vm6 = vcmp.eq.s32.totalorder %v2093_v30, %v1941_v15 }
  0x26   : > { %1711 = vmatprep.subr.msk.bf16.mxu1 %vm1710_vm9, %v1845_v20  ;;  %vm1680_vm12 = vmpackc.low %vm524_vm5, %vm520_vm4  ;;  %vm534_vm4 = vcmp.eq.s32.totalorder %v2067_v29, %v1950_v18  ;;  %vm539_vm9 = vcmp.eq.s32.totalorder %v2093_v30, %v1944_v16 }
  0x27   : > { %1681 = vmatpush1.bf16.msk.msra.mxu0 %vm1680_vm12, %v1845_v20  ;;  %vm1712_vm15 = vmpackc.low %vm526_vm8, %vm522_vm7  ;;  %vm541_vm7 = vcmp.eq.s32.totalorder %v2096_v31, %v1941_v15  ;;  %vm536_vm12 = vcmp.eq.s32.totalorder %v2093_v30, %v1947_v17 }
  0x28   : > { %1713 = vmatpush1.bf16.msk.msra.mxu1 %vm1712_vm15, %v1845_v20  ;;  %vm1682_vm2 = vmpackc.low %vm533_vm11, %vm529_vm10  ;;  %vm543_vm10 = vcmp.eq.s32.totalorder %v2096_v31, %v1944_v16  ;;  %vm538_vm15 = vcmp.eq.s32.totalorder %v2093_v30, %v1950_v18 }
  0x29   : > { %1683 = vmatprep.subr.msk.bf16.mxu0 %vm1682_vm2, %v1845_v20  ;;  %vm1714_vm5 = vmpackc.low %vm535_vm14, %vm531_vm13  ;;  %vm540_vm13 = vcmp.eq.s32.totalorder %v2096_v31, %v1947_v17  ;;  %vm545_vm2 = vcmp.eq.s32.totalorder %v2119_v32, %v1941_v15 }
  0x2a   : > { %1715 = vmatprep.subr.msk.bf16.mxu1 %vm1714_vm5, %v1845_v20  ;;  %vm1684_vm8 = vmpackc.low %vm532_vm1, %vm528_vm0  ;;  %vm542_vm0 = vcmp.eq.s32.totalorder %v2096_v31, %v1950_v18  ;;  %vm547_vm5 = vcmp.eq.s32.totalorder %v2119_v32, %v1944_v16 }
  0x2b   : > { %1685 = vmatpush1.bf16.msk.msra.mxu0 %vm1684_vm8, %v1845_v20  ;;  %vm1716_vm11 = vmpackc.low %vm534_vm4, %vm530_vm3  ;;  %vm549_vm3 = vcmp.eq.s32.totalorder %v2122_v33, %v1941_v15  ;;  %vm544_vm8 = vcmp.eq.s32.totalorder %v2119_v32, %v1947_v17 }
  0x2c   : > { %1717 = vmatpush1.bf16.msk.msra.mxu1 %vm1716_vm11, %v1845_v20  ;;  %vm1686_vm14 = vmpackc.low %vm541_vm7, %vm537_vm6  ;;  %vm551_vm6 = vcmp.eq.s32.totalorder %v2122_v33, %v1944_v16  ;;  %vm546_vm11 = vcmp.eq.s32.totalorder %v2119_v32, %v1950_v18 }
  0x2d   : > { %1687 = vmatprep.subr.msk.bf16.mxu0 %vm1686_vm14, %v1845_v20  ;;  %vm1718_vm1 = vmpackc.low %vm543_vm10, %vm539_vm9  ;;  %vm548_vm9 = vcmp.eq.s32.totalorder %v2122_v33, %v1947_v17  ;;  %vm279_vm14 = vcmp.eq.s32.totalorder %v1892_v2, %v2146_v35 }
  0x2e   : > { %1719 = vmatprep.subr.msk.bf16.mxu1 %vm1718_vm1, %v1845_v20  ;;  %vm1688_vm4 = vmpackc.low %vm540_vm13, %vm536_vm12  ;;  %vm550_vm12 = vcmp.eq.s32.totalorder %v2122_v33, %v1950_v18  ;;  %vm281_vm1 = vcmp.eq.s32.totalorder %v1892_v2, %v2154_v36 }
  0x2f   : > { %1689 = vmatpush1.bf16.msk.msra.mxu0 %vm1688_vm4, %v1845_v20  ;;  %vm1720_vm7 = vmpackc.low %vm542_vm0, %vm538_vm15  ;;  %vm283_vm15 = vcmp.eq.s32.totalorder %v1926_v10, %v2146_v35  ;;  %vm278_vm4 = vcmp.eq.s32.totalorder %v1892_v2, %v2162_v37 }
  0x30   : > { %1721 = vmatpush1.bf16.msk.msra.mxu1 %vm1720_vm7, %v1845_v20  ;;  %vm1690_vm10 = vmpackc.low %vm549_vm3, %vm545_vm2  ;;  %vm285_vm2 = vcmp.eq.s32.totalorder %v1926_v10, %v2154_v36  ;;  %vm280_vm7 = vcmp.eq.s32.totalorder %v1892_v2, %v2170_v38 }
  0x31   : > { %1691 = vmatprep.subr.msk.bf16.mxu0 %vm1690_vm10, %v1845_v20  ;;  %vm1722_vm13 = vmpackc.low %vm551_vm6, %vm547_vm5  ;;  %vm282_vm5 = vcmp.eq.s32.totalorder %v1926_v10, %v2162_v37  ;;  %vm287_vm10 = vcmp.eq.s32.totalorder %v1935_v13, %v2146_v35 }
  0x32   : > { %1723 = vmatprep.subr.msk.bf16.mxu1 %vm1722_vm13, %v1845_v20  ;;  %vm1692_vm0 = vmpackc.low %vm548_vm9, %vm544_vm8  ;;  %vm284_vm8 = vcmp.eq.s32.totalorder %v1926_v10, %v2170_v38  ;;  %vm289_vm13 = vcmp.eq.s32.totalorder %v1935_v13, %v2154_v36 }
  0x33   : > { %1693 = vmatpush1.bf16.msk.msra.mxu0 %vm1692_vm0, %v1845_v20  ;;  %vm1724_vm3 = vmpackc.low %vm550_vm12, %vm546_vm11  ;;  %vm291_vm11 = vcmp.eq.s32.totalorder %v1938_v14, %v2146_v35  ;;  %vm286_vm0 = vcmp.eq.s32.totalorder %v1935_v13, %v2162_v37 }
  0x34   : > { %1725 = vmatpush1.bf16.msk.msra.mxu1 %vm1724_vm3, %v1845_v20  ;;  %vm1726_vm6 = vmpackc.low %vm283_vm15, %vm279_vm14  ;;  %vm293_vm14 = vcmp.eq.s32.totalorder %v1938_v14, %v2154_v36  ;;  %vm288_vm3 = vcmp.eq.s32.totalorder %v1935_v13, %v2170_v38 }
  0x35   : > { %1727 = vmatprep.subr.msk.bf16.mxu0 %vm1726_vm6, %v1845_v20  ;;  %vm1758_vm9 = vmpackc.low %vm285_vm2, %vm281_vm1  ;;  %vm290_vm1 = vcmp.eq.s32.totalorder %v1938_v14, %v2162_v37  ;;  %vm295_vm6 = vcmp.eq.s32.totalorder %v1976_v21, %v2146_v35 }
  0x36   : > { %1759 = vmatprep.subr.msk.bf16.mxu1 %vm1758_vm9, %v1845_v20  ;;  %753 = vmatmul.mubr.f32.vlgmr.msra.gmra.mrb[0].mxu0 %v684_v39  ;;  %vm1728_vm12 = vmpackc.low %vm282_vm5, %vm278_vm4  ;;  %vm292_vm4 = vcmp.eq.s32.totalorder %v1938_v14, %v2170_v38  ;;  %vm297_vm9 = vcmp.eq.s32.totalorder %v1976_v21, %v2154_v36 }
  0x37   : > { %842 = vmatmul.mubr.f32.vlgmr.msra.gmra.mrb[0].mxu1 %v684_v39  ;;  %1729 = vmatpush1.bf16.msk.msra.mxu0 %vm1728_vm12, %v1845_v20  ;;  %vm1760_vm15 = vmpackc.low %vm284_vm8, %vm280_vm7  ;;  %vm299_vm7 = vcmp.eq.s32.totalorder %v1979_v22, %v2146_v35  ;;  %vm294_vm12 = vcmp.eq.s32.totalorder %v1976_v21, %v2162_v37 }
  0x38   : > { %1761 = vmatpush1.bf16.msk.msra.mxu1 %vm1760_vm15, %v1845_v20  ;;  %vm1730_vm2 = vmpackc.low %vm291_vm11, %vm287_vm10  ;;  %758 = vmatprep.mubr.f32.mxu0 %v1842_v1  ;;  %vm301_vm10 = vcmp.eq.s32.totalorder %v1979_v22, %v2154_v36  ;;  %vm296_vm15 = vcmp.eq.s32.totalorder %v1976_v21, %v2170_v38 }
  0x39   : > { %1731 = vmatprep.subr.msk.bf16.mxu0 %vm1730_vm2, %v1845_v20  ;;  %vm1762_vm5 = vmpackc.low %vm293_vm14, %vm289_vm13  ;;  %847 = vmatprep.mubr.f32.mxu1 %v1842_v1  ;;  %vm298_vm13 = vcmp.eq.s32.totalorder %v1979_v22, %v2162_v37  ;;  %vm303_vm2 = vcmp.eq.s32.totalorder %v2002_v23, %v2146_v35 }
  0x3a   : > { %1763 = vmatprep.subr.msk.bf16.mxu1 %vm1762_vm5, %v1845_v20  ;;  %vm1732_vm8 = vmpackc.low %vm290_vm1, %vm286_vm0  ;;  %759 = vmatmul.mubr.f32.gmra.mrb[2].mxu0 %v685_v40  ;;  %vm300_vm0 = vcmp.eq.s32.totalorder %v1979_v22, %v2170_v38  ;;  %vm305_vm5 = vcmp.eq.s32.totalorder %v2002_v23, %v2154_v36 }
  0x3b   : > { %1733 = vmatpush1.bf16.msk.msra.mxu0 %vm1732_vm8, %v1845_v20  ;;  %vm1764_vm11 = vmpackc.low %vm292_vm4, %vm288_vm3  ;;  %848 = vmatmul.mubr.f32.gmra.mrb[2].mxu1 %v685_v40  ;;  %vm307_vm3 = vcmp.eq.s32.totalorder %v2005_v24, %v2146_v35  ;;  %vm302_vm8 = vcmp.eq.s32.totalorder %v2002_v23, %v2162_v37 }
  0x3c   : > { %1765 = vmatpush1.bf16.msk.msra.mxu1 %vm1764_vm11, %v1845_v20  ;;  %vm1734_vm14 = vmpackc.low %vm299_vm7, %vm295_vm6  ;;  %764 = vmatprep.mubr.f32.mxu0 %v1842_v1  ;;  %vm309_vm6 = vcmp.eq.s32.totalorder %v2005_v24, %v2154_v36  ;;  %vm304_vm11 = vcmp.eq.s32.totalorder %v2002_v23, %v2170_v38 }
  0x3d   : > { %1735 = vmatprep.subr.msk.bf16.mxu0 %vm1734_vm14, %v1845_v20  ;;  %vm1766_vm1 = vmpackc.low %vm301_vm10, %vm297_vm9  ;;  %853 = vmatprep.mubr.f32.mxu1 %v1842_v1  ;;  %vm306_vm9 = vcmp.eq.s32.totalorder %v2005_v24, %v2162_v37  ;;  %vm311_vm14 = vcmp.eq.s32.totalorder %v2028_v25, %v2146_v35 }
  0x3e   : > { %1767 = vmatprep.subr.msk.bf16.mxu1 %vm1766_vm1, %v1845_v20  ;;  %vm1736_vm4 = vmpackc.low %vm298_vm13, %vm294_vm12  ;;  %765 = vmatmul.mubr.f32.gmra.mrb[4].mxu0 %v686_v41  ;;  %vm308_vm12 = vcmp.eq.s32.totalorder %v2005_v24, %v2170_v38  ;;  %vm313_vm1 = vcmp.eq.s32.totalorder %v2028_v25, %v2154_v36 }
  0x3f   : > { %1737 = vmatpush1.bf16.msk.msra.mxu0 %vm1736_vm4, %v1845_v20  ;;  %vm1768_vm7 = vmpackc.low %vm300_vm0, %vm296_vm15  ;;  %854 = vmatmul.mubr.f32.gmra.mrb[4].mxu1 %v686_v41  ;;  %vm315_vm15 = vcmp.eq.s32.totalorder %v2031_v26, %v2146_v35  ;;  %vm310_vm4 = vcmp.eq.s32.totalorder %v2028_v25, %v2162_v37 }
  0x40   : > { %1769 = vmatpush1.bf16.msk.msra.mxu1 %vm1768_vm7, %v1845_v20  ;;  %vm1738_vm10 = vmpackc.low %vm307_vm3, %vm303_vm2  ;;  %770 = vmatprep.mubr.f32.mxu0 %v1842_v1  ;;  %vm317_vm2 = vcmp.eq.s32.totalorder %v2031_v26, %v2154_v36  ;;  %vm312_vm7 = vcmp.eq.s32.totalorder %v2028_v25, %v2170_v38 }
  0x41   : > { %1739 = vmatprep.subr.msk.bf16.mxu0 %vm1738_vm10, %v1845_v20  ;;  %vm1770_vm13 = vmpackc.low %vm309_vm6, %vm305_vm5  ;;  %859 = vmatprep.mubr.f32.mxu1 %v1842_v1  ;;  %vm314_vm5 = vcmp.eq.s32.totalorder %v2031_v26, %v2162_v37  ;;  %vm319_vm10 = vcmp.eq.s32.totalorder %v2064_v28, %v2146_v35 }
  0x42   : > { %1771 = vmatprep.subr.msk.bf16.mxu1 %vm1770_vm13, %v1845_v20  ;;  %vm1740_vm0 = vmpackc.low %vm306_vm9, %vm302_vm8  ;;  %771 = vmatmul.mubr.f32.gmra.mrb[6].mxu0 %v687_v42  ;;  %vm316_vm8 = vcmp.eq.s32.totalorder %v2031_v26, %v2170_v38  ;;  %vm321_vm13 = vcmp.eq.s32.totalorder %v2064_v28, %v2154_v36 }
  0x43   : > { %1741 = vmatpush1.bf16.msk.msra.mxu0 %vm1740_vm0, %v1845_v20  ;;  %vm1772_vm3 = vmpackc.low %vm308_vm12, %vm304_vm11  ;;  %860 = vmatmul.mubr.f32.gmra.mrb[6].mxu1 %v687_v42  ;;  %vm323_vm11 = vcmp.eq.s32.totalorder %v2067_v29, %v2146_v35  ;;  %vm318_vm0 = vcmp.eq.s32.totalorder %v2064_v28, %v2162_v37 }
  0x44   : > { %1773 = vmatpush1.bf16.msk.msra.mxu1 %vm1772_vm3, %v1845_v20  ;;  %vm1742_vm6 = vmpackc.low %vm315_vm15, %vm311_vm14  ;;  %930 = vmatprep.mubr.f32.mxu0 %v1842_v1  ;;  %vm325_vm14 = vcmp.eq.s32.totalorder %v2067_v29, %v2154_v36  ;;  %vm320_vm3 = vcmp.eq.s32.totalorder %v2064_v28, %v2170_v38 }
  0x45   : > { %1743 = vmatprep.subr.msk.bf16.mxu0 %vm1742_vm6, %v1845_v20  ;;  %vm1774_vm9 = vmpackc.low %vm317_vm2, %vm313_vm1  ;;  %1019 = vmatprep.mubr.f32.mxu1 %v1842_v1  ;;  %vm322_vm1 = vcmp.eq.s32.totalorder %v2067_v29, %v2162_v37  ;;  %vm327_vm6 = vcmp.eq.s32.totalorder %v2093_v30, %v2146_v35 }
  0x46   : > { %1775 = vmatprep.subr.msk.bf16.mxu1 %vm1774_vm9, %v1845_v20  ;;  %vm1744_vm12 = vmpackc.low %vm314_vm5, %vm310_vm4  ;;  %vm324_vm4 = vcmp.eq.s32.totalorder %v2067_v29, %v2170_v38  ;;  %vm329_vm9 = vcmp.eq.s32.totalorder %v2093_v30, %v2154_v36 }
  0x47   : > { %1745 = vmatpush1.bf16.msk.msra.mxu0 %vm1744_vm12, %v1845_v20  ;;  %vm1776_vm15 = vmpackc.low %vm316_vm8, %vm312_vm7  ;;  %vm331_vm7 = vcmp.eq.s32.totalorder %v2096_v31, %v2146_v35  ;;  %vm326_vm12 = vcmp.eq.s32.totalorder %v2093_v30, %v2162_v37 }
  0x48   : > { %1777 = vmatpush1.bf16.msk.msra.mxu1 %vm1776_vm15, %v1845_v20  ;;  %vm1746_vm2 = vmpackc.low %vm323_vm11, %vm319_vm10  ;;  %vm333_vm10 = vcmp.eq.s32.totalorder %v2096_v31, %v2154_v36  ;;  %vm328_vm15 = vcmp.eq.s32.totalorder %v2093_v30, %v2170_v38 }
  0x49   : > { %1747 = vmatprep.subr.msk.bf16.mxu0 %vm1746_vm2, %v1845_v20  ;;  %vm1778_vm5 = vmpackc.low %vm325_vm14, %vm321_vm13  ;;  %vm330_vm13 = vcmp.eq.s32.totalorder %v2096_v31, %v2162_v37  ;;  %vm335_vm2 = vcmp.eq.s32.totalorder %v2119_v32, %v2146_v35 }
  0x4a   : > { %1779 = vmatprep.subr.msk.bf16.mxu1 %vm1778_vm5, %v1845_v20  ;;  %vm1748_vm8 = vmpackc.low %vm322_vm1, %vm318_vm0  ;;  %vm332_vm0 = vcmp.eq.s32.totalorder %v2096_v31, %v2170_v38  ;;  %vm337_vm5 = vcmp.eq.s32.totalorder %v2119_v32, %v2154_v36 }
  0x4b   : > { %1749 = vmatpush1.bf16.msk.msra.mxu0 %vm1748_vm8, %v1845_v20  ;;  %vm1780_vm11 = vmpackc.low %vm324_vm4, %vm320_vm3  ;;  %vm339_vm3 = vcmp.eq.s32.totalorder %v2122_v33, %v2146_v35  ;;  %vm334_vm8 = vcmp.eq.s32.totalorder %v2119_v32, %v2162_v37 }
  0x4c   : > { %1781 = vmatpush1.bf16.msk.msra.mxu1 %vm1780_vm11, %v1845_v20  ;;  %vm1750_vm14 = vmpackc.low %vm331_vm7, %vm327_vm6  ;;  %vm341_vm6 = vcmp.eq.s32.totalorder %v2122_v33, %v2154_v36  ;;  %vm336_vm11 = vcmp.eq.s32.totalorder %v2119_v32, %v2170_v38 }
  0x4d   : > { %1751 = vmatprep.subr.msk.bf16.mxu0 %vm1750_vm14, %v1845_v20  ;;  %vm1782_vm1 = vmpackc.low %vm333_vm10, %vm329_vm9  ;;  %vm338_vm9 = vcmp.eq.s32.totalorder %v2122_v33, %v2162_v37 }
  0x4e   : > { %1783 = vmatprep.subr.msk.bf16.mxu1 %vm1782_vm1, %v1845_v20  ;;  %vm1752_vm4 = vmpackc.low %vm330_vm13, %vm326_vm12  ;;  %vm340_vm12 = vcmp.eq.s32.totalorder %v2122_v33, %v2170_v38 }
  0x4f   : > { %1753 = vmatpush1.bf16.msk.msra.mxu0 %vm1752_vm4, %v1845_v20  ;;  %vm1784_vm7 = vmpackc.low %vm332_vm0, %vm328_vm15 }
  0x50   : > { %1785 = vmatpush1.bf16.msk.msra.mxu1 %vm1784_vm7, %v1845_v20  ;;  %vm1754_vm10 = vmpackc.low %vm339_vm3, %vm335_vm2 }
  0x51   : > { %1755 = vmatprep.subr.msk.bf16.mxu0 %vm1754_vm10, %v1845_v20  ;;  %vm1786_vm13 = vmpackc.low %vm341_vm6, %vm337_vm5 }
  0x52   : > { %1787 = vmatprep.subr.msk.bf16.mxu1 %vm1786_vm13, %v1845_v20  ;;  %vm1756_vm14 = vmpackc.low %vm338_vm9, %vm334_vm8 }
  0x53   : > { %1757 = vmatpush1.bf16.msk.msra.mxu0 %vm1756_vm14, %v1845_v20  ;;  %vm1788_vm15 = vmpackc.low %vm340_vm12, %vm336_vm11 }
  0x54   : > { %1789 = vmatpush1.bf16.msk.msra.mxu1 %vm1788_vm15, %v1845_v20 }
  0x56   : > { %931 = vmatmul.mubr.f32.vlgmr.msra.gmra.mrb[0].mxu0 %v680_v45 }
  0x57   : > { %1020 = vmatmul.mubr.f32.vlgmr.msra.gmra.mrb[0].mxu1 %v680_v45  ;;  %936 = vmatprep.mubr.f32.mxu0 %v1842_v1 }
  0x58   : > { %1025 = vmatprep.mubr.f32.mxu1 %v1842_v1 }
  0x5a   : > { %937 = vmatmul.mubr.f32.gmra.mrb[2].mxu0 %v681_v46 }
  0x5b   : > { %1026 = vmatmul.mubr.f32.gmra.mrb[2].mxu1 %v681_v46  ;;  %942 = vmatprep.mubr.f32.mxu0 %v1842_v1 }
  0x5c   : > { %1031 = vmatprep.mubr.f32.mxu1 %v1842_v1 }
  0x5e   : > { %943 = vmatmul.mubr.f32.gmra.mrb[4].mxu0 %v682_v47 }
  0x5f   : > { %1032 = vmatmul.mubr.f32.gmra.mrb[4].mxu1 %v682_v47  ;;  %948 = vmatprep.mubr.f32.mxu0 %v1842_v1 }
  0x60   : > { %1037 = vmatprep.mubr.f32.mxu1 %v1842_v1 }
  0x62   : > { %949 = vmatmul.mubr.f32.gmra.mrb[6].mxu0 %v683_v48 }
  0x63   : > { %1038 = vmatmul.mubr.f32.gmra.mrb[6].mxu1 %v683_v48 }
  0x87   : > { %v2409_v49 = vpop.permute.xlu1 %1077  ;;  %v1068_v50 = vpop.permute.xlu0 %1067 }
  0x8b   : > { %v1073_v53 = vpop.permute.xlu0 %1072 }
  0x8c   : > { %v1119_v51 = vpop.permute.xlu1 %1118 }
  0x91   : > { %v2411_v3 = vpop.permute.xlu1 %1082 }
  0x92   : > { %v1123_v17 = vpop.permute.xlu0 %1122 }
  0x98   : > { %v1127_v38 = vpop.permute.xlu1 %1126 }
 0x129   : > { %v932_v52 = vpop.f32.mrb[0].mxu0 }
 0x12a   : > { %vm1049_vm0 = vcmp.gt.f32.partialorder %v932_v52, 0.0  ;;  %v1085_v54 = vmul.f32 %v1068_v50, %v932_v52  ;;  %v1021_v55 = vpop.f32.mrb[0].mxu1  ;;  %v934_v56 = vpop.f32.mrb[1].mxu0 }
 0x12b   : > { %vm1051_vm1 = vcmp.gt.f32.partialorder %v1021_v55, 0.0  ;;  %v1087_v57 = vmul.f32 %v1068_v50, %v1021_v55  ;;  %vm1050_vm2 = vcmp.gt.f32.partialorder %v934_v56, 0.0  ;;  %v1086_v58 = vmul.f32 %v1068_v50, %v934_v56  ;;  %v1023_v59 = vpop.f32.mrb[1].mxu1 }
 0x12c   : > { %v1101_v60 = vsel %vm1049_vm0, %v932_v52, %v1085_v54  ;;  %vm1052_vm3 = vcmp.gt.f32.partialorder %v1023_v59, 0.0  ;;  %v1088_v61 = vmul.f32 %v1068_v50, %v1023_v59 }
 0x12d   : > { %v1102_v62 = vsel %vm1050_vm2, %v934_v56, %v1086_v58  ;;  %v938_v63 = vpop.f32.mrb[2].mxu0  ;;  %v1103_v4 = vsel %vm1051_vm1, %v1021_v55, %v1087_v57  ;;  %v1133_v10 = vmul.f32 %v1119_v51, %v1101_v60  ;;  %v1131_v60 = vpop.permute.xlu0 %1130 }
 0x12e   : > { %v1104_v5 = vsel %vm1052_vm3, %v1023_v59, %v1088_v61  ;;  %vm1053_vm4 = vcmp.gt.f32.partialorder %v938_v63, 0.0  ;;  %v1027_v11 = vpop.f32.mrb[2].mxu1  ;;  %v940_v12 = vpop.f32.mrb[3].mxu0  ;;  %v1134_v13 = vmul.f32 %v1119_v51, %v1102_v62  ;;  %v1089_v14 = vmul.f32 %v1073_v53, %v938_v63 }
 0x12f   : > { %vm1055_vm5 = vcmp.gt.f32.partialorder %v1027_v11, 0.0  ;;  %v1091_v15 = vmul.f32 %v1073_v53, %v1027_v11  ;;  %v1029_v16 = vpop.f32.mrb[3].mxu1  ;;  %vm1054_vm6 = vcmp.gt.f32.partialorder %v940_v12, 0.0  ;;  %v1090_v18 = vmul.f32 %v1073_v53, %v940_v12 }
 0x130   : > { %vm1056_vm7 = vcmp.gt.f32.partialorder %v1029_v16, 0.0  ;;  %v1092_v19 = vmul.f32 %v1073_v53, %v1029_v16  ;;  %v1135_v20 = vmul.f32 %v1119_v51, %v1103_v4  ;;  %v1136_v21 = vmul.f32 %v1119_v51, %v1104_v5 }
 0x131   : > { %v1105_v22 = vsel %vm1053_vm4, %v938_v63, %v1089_v14  ;;  %v1107_v23 = vsel %vm1055_vm5, %v1027_v11, %v1091_v15  ;;  %v944_v24 = vpop.f32.mrb[4].mxu0  ;;  %v1106_v25 = vsel %vm1054_vm6, %v940_v12, %v1090_v18  ;;  %vm1308_vm4 = vcmask 1040384  }
 0x132   : > { %v1108_v26 = vsel %vm1056_vm7, %v1029_v16, %v1092_v19  ;;  %v1137_v27 = vmul.f32 %v1123_v17, %v1105_v22  ;;  %v1139_v28 = vmul.f32 %v1123_v17, %v1107_v23  ;;  %v1033_v29 = vpop.f32.mrb[4].mxu1  ;;  %v946_v30 = vpop.f32.mrb[5].mxu0  ;;  %v1138_v31 = vmul.f32 %v1123_v17, %v1106_v25 }
 0x133   : > { %v1140_v32 = vmul.f32 %v1123_v17, %v1108_v26  ;;  %vm1057_vm8 = vcmp.gt.f32.partialorder %v944_v24, 0.0  ;;  %v1093_v33 = vmul.f32 %v2409_v49, %v944_v24  ;;  %v1035_v34 = vpop.f32.mrb[5].mxu1  ;;  %vm1059_vm9 = vcmp.gt.f32.partialorder %v1033_v29, 0.0 }
 0x134   : > { %v1149_v35 = vadd.f32 %v1137_v27, %v1133_v10  ;;  %v1167_v36 = vadd.f32 %v1139_v28, %v1135_v20  ;;  %v1095_v37 = vmul.f32 %v2409_v49, %v1033_v29  ;;  %v1158_v39 = vadd.f32 %v1138_v31, %v1134_v13 }
 0x135   : > { %v1176_v40 = vadd.f32 %v1140_v32, %v1136_v21  ;;  %v1109_v41 = vsel %vm1057_vm8, %v944_v24, %v1093_v33  ;;  %vm1058_vm10 = vcmp.gt.f32.partialorder %v946_v30, 0.0  ;;  %v950_v42 = vpop.f32.mrb[6].mxu0  ;;  %v1094_v44 = vmul.f32 %v2409_v49, %v946_v30 }
 0x136   : > { %v1111_v43 = vsel %vm1059_vm9, %v1033_v29, %v1095_v37  ;;  %vm1060_vm11 = vcmp.gt.f32.partialorder %v1035_v34, 0.0  ;;  %v1096_v45 = vmul.f32 %v2409_v49, %v1035_v34  ;;  %v1039_v46 = vpop.f32.mrb[6].mxu1  ;;  %v952_v47 = vpop.f32.mrb[7].mxu0  ;;  %v1141_v48 = vmul.f32 %v1127_v38, %v1109_v41 }
 0x137   : > { %v1143_v50 = vmul.f32 %v1127_v38, %v1111_v43  ;;  %vm1061_vm12 = vcmp.gt.f32.partialorder %v950_v42, 0.0  ;;  %v1097_v51 = vmul.f32 %v2411_v3, %v950_v42  ;;  %v1041_v52 = vpop.f32.mrb[7].mxu1  ;;  %v1110_v53 = vsel %vm1058_vm10, %v946_v30, %v1094_v44 }
 0x138   : > { %v1112_v54 = vsel %vm1060_vm11, %v1035_v34, %v1096_v45  ;;  %vm1063_vm13 = vcmp.gt.f32.partialorder %v1039_v46, 0.0  ;;  %v1099_v55 = vmul.f32 %v2411_v3, %v1039_v46  ;;  %v1142_v56 = vmul.f32 %v1127_v38, %v1110_v53 }
 0x139   : > { %v1144_v57 = vmul.f32 %v1127_v38, %v1112_v54  ;;  %v1150_v58 = vadd.f32 %v1149_v35, %v1141_v48  ;;  %v1168_v59 = vadd.f32 %v1167_v36, %v1143_v50  ;;  %v1113_v61 = vsel %vm1061_vm12, %v950_v42, %v1097_v51 }
 0x13a   : > { %v1115_v49 = vsel %vm1063_vm13, %v1039_v46, %v1099_v55  ;;  %vm1062_vm14 = vcmp.gt.f32.partialorder %v952_v47, 0.0  ;;  %v1098_v62 = vmul.f32 %v2411_v3, %v952_v47  ;;  %v1145_v63 = vmul.f32 %v1131_v60, %v1113_v61 }
 0x13b   : > { %v1147_v4 = vmul.f32 %v1131_v60, %v1115_v49  ;;  %v1159_v5 = vadd.f32 %v1158_v39, %v1142_v56  ;;  %vm1064_vm15 = vcmp.gt.f32.partialorder %v1041_v52, 0.0  ;;  %v1100_v11 = vmul.f32 %v2411_v3, %v1041_v52  ;;  %v1188_v39 = vpop.permute.xlu1 %1187 }
 0x13c   : > { %v1114_v10 = vsel %vm1062_vm14, %v952_v47, %v1098_v62  ;;  %v1177_v12 = vadd.f32 %v1176_v40, %v1144_v57  ;;  %v1151_v13 = vadd.f32 %v1150_v58, %v1145_v63  ;;  %v1847_v29 = vmov 1966171168   ;;  %v1194_v58 = vld [vmem:[%s238_s6] sm:$0xf] }
 0x13d   : > { %v1169_v14 = vadd.f32 %v1168_v59, %v1147_v4  ;;  %v1146_v15 = vmul.f32 %v1131_v60, %v1114_v10  ;;  %v1116_v16 = vsel %vm1064_vm15, %v1041_v52, %v1100_v11  ;;  %v1202_v30 = vunpack.c.l.s4 %v1847_v29 }
 0x13e   : > { %v1152_v17 = vrot.slane %v1151_v13, 4  ;;  %v1148_v20 = vmul.f32 %v1131_v60, %v1116_v16  ;;  %v1236_v49 = vand.u32 127, %v244_v0  ;;  %v1240_v10 = vstv %s1655_s7 }
 0x13f   : > { %v1170_v18 = vrot.slane %v1169_v14, 4  ;;  %v1160_v19 = vadd.f32 %v1159_v5, %v1146_v15  ;;  %v1203_v38 = vunpack.c.0.s8 %v1202_v30 }
 0x140   : > { %v1153_v21 = vadd.f32 %v1152_v17, %v1151_v13  ;;  %v1178_v24 = vadd.f32 %v1177_v12, %v1148_v20  ;;  %v1238_v4 = vadd.s32 256, %v1236_v49  ;;  %v1239_v5 = vadd.s32 384, %v1236_v49 }
 0x141   : > { %v1171_v22 = vadd.f32 %v1170_v18, %v1169_v14  ;;  %v1161_v23 = vrot.slane %v1160_v19, 4  ;;  %v1206_v51 = vsub.s32 %v1203_v38, %v1892_v2  ;;  %v1237_v2 = vadd.s32 128, %v1236_v49 }
 0x142   : > { %v1179_v26 = vrot.slane %v1178_v24, 4  ;;  %v1154_v27 = vrot.slane %v1153_v21, 2  ;;  %v1241_v11 = vadd.s32 %v1240_v10, %v1236_v49  ;;  %v1243_v13 = vadd.s32 %v1240_v10, %v1238_v4 }
 0x143   : > { %v1162_v25 = vadd.f32 %v1161_v23, %v1160_v19  ;;  %v1172_v28 = vrot.slane %v1171_v22, 2  ;;  %v1242_v12 = vadd.s32 %v1240_v10, %v1237_v2  ;;  %v1244_v14 = vadd.s32 %v1240_v10, %v1239_v5 }
 0x144   : > { %v1180_v31 = vadd.f32 %v1179_v26, %v1178_v24  ;;  %v1155_v32 = vadd.f32 %v1154_v27, %v1153_v21  ;;  %vm1245_vm0 = vcmp.lt.s32.totalorder %v1241_v11, 2000  ;;  %vm1247_vm2 = vcmp.lt.s32.totalorder %v1243_v13, 2000 }
 0x145   : > { %v1163_v3 = vrot.slane %v1162_v25, 2  ;;  %v1173_v33 = vadd.f32 %v1172_v28, %v1171_v22  ;;  %vm1246_vm1 = vcmp.lt.s32.totalorder %v1242_v12, 2000  ;;  %vm1248_vm3 = vcmp.lt.s32.totalorder %v1244_v14, 2000 }
 0x146   : > { %v1181_v34 = vrot.slane %v1180_v31, 2  ;;  %v1156_v35 = vrot.slane %v1155_v32, 1  ;;  %v1656_v15 = vsel %vm1245_vm0, 1.0, %v1842_v1  ;;  %v1657_v0 = vsel %vm1246_vm1, 1.0, %v1842_v1 }
 0x147   : > { %v1164_v36 = vadd.f32 %v1163_v3, %v1162_v25  ;;  %v1174_v37 = vrot.slane %v1173_v33, 1  ;;  %v1658_v16 = vsel %vm1247_vm2, 1.0, %v1842_v1  ;;  %v1659_v17 = vsel %vm1248_vm3, 1.0, %v1842_v1 }
 0x148   : > { %v1157_v40 = vadd.f32 %v1156_v35, %v1155_v32  ;;  %v1182_v43 = vadd.f32 %v1181_v34, %v1180_v31  ;;  %v1261_v20 = vcombine.low %v1656_v15, %v1657_v0  ;;  %v1262_v21 = vcombine.low %v1658_v16, %v1659_v17 }
 0x149   : > { %v1165_v41 = vrot.slane %v1164_v36, 1  ;;  %v1175_v42 = vadd.f32 %v1174_v37, %v1173_v33 }
 0x14a   : > { %v1183_v45 = vrot.slane %v1182_v43, 1  ;;  %v1190_v46 = vadd.f32 %v1188_v39, %v1157_v40  ;;  %v1269_v22 = vrot.slane %v1261_v20, %v1206_v51  ;;  %v1276_v23 = vrot.slane %v1262_v21, %v1206_v51 }
 0x14b   : > { %v1166_v44 = vadd.f32 %v1165_v41, %v1164_v36  ;;  %v1192_v50 = vadd.f32 %v1188_v39, %v1175_v42 }
 0x14c   : > { %v1184_v47 = vadd.f32 %v1183_v45, %v1182_v43  ;;  %v1277_v24 = vcombine.low %v1269_v22, %v1276_v23 }
 0x14d   : > { %v1191_v48 = vadd.f32 %v1188_v39, %v1166_v44 }
 0x14e   : > { %v1193_v52 = vadd.f32 %v1188_v39, %v1184_v47  ;;  %v1284_v28 = vrot.slane %v1277_v24, %v1206_v51 }
 0x14f   : > { %v1199_v53 = vcombine.low %v1190_v46, %v1191_v48 }
 0x150   : > { %v1200_v54 = vcombine.low %v1192_v50, %v1193_v52 }
 0x151   : > { %v1207_v55 = vrot.slane %v1199_v53, %v1206_v51 }
 0x152   : > { %v1214_v56 = vrot.slane %v1200_v54, %v1206_v51 }
 0x154   : > { %v1215_v57 = vcombine.low %v1207_v55, %v1214_v56 }
 0x156   : > { %v1222_v59 = vrot.slane %v1215_v57, %v1206_v51 }
 0x158   : > { %v1224_v60 = vmul.f32 %v1222_v59, %v1194_v58 }
 0x15a   : > { %v1226_v61 = vand.u32 2147483647, %v1224_v60  ;;  %v1225_v26 = vmax.f32 %v1224_v60, 0.0 }
 0x15c   : > { %v1227_v62 = vsub.f32 0.0, %v1226_v61 }
 0x15e   : > { %v1228_v63 = vmul.f32 1.442695, %v1227_v62 }
 0x160   : > { %1830 = vpow2.f32 %v1228_v63 }
 0x16a   : > { %v1831_v18 = vpop.eup %1830 }
 0x16b   : > { %v1230_v19 = vadd.f32 1.0, %v1831_v18 }
 0x16d   : > { %1832 = vlog2.f32 %v1230_v19 }
 0x177   : > { %v1833_v25 = vpop.eup %1832 }
 0x178   : > { %v1232_v27 = vmul.f32 0.6931472, %v1833_v25 }
 0x17a   : > { %v1233_v29 = vadd.f32 %v1232_v27, %v1225_v26 }
 0x17c   : > { %v1286_v30 = vmul.f32 %v1284_v28, %v1233_v29 }
 0x17e   : > { %v1291_v3 = vrot.slane %v1286_v30, %v1913_v8  ;;  %v1295_v31 = vrot.slane %v1286_v30, %v1907_v6  ;;  %v1299_v1 = vrot.slane %v1286_v30, %v1918_v9  ;;  %v1303_v32 = vrot.slane %v1286_v30, %v1910_v7 }
 0x180   : > { %v1309_v33 = vsel %vm1308_vm4, %v1291_v3, 0.0  ;;  %v1310_v34 = vsel %vm1308_vm4, %v1295_v31, 0.0  ;;  %v1312_v36 = vsel %vm1308_vm4, %v1299_v1, 0.0  ;;  %v1314_v38 = vsel %vm1308_vm4, %v1303_v32, 0.0 }
 0x181   : > { %v1311_v35 = vadd.f32 %v1310_v34, %v1309_v33 }
 0x183   : > { %v1313_v37 = vadd.f32 %v1312_v36, %v1311_v35 }
 0x185   : > { %v1315_v39 = vadd.f32 %v1314_v38, %v1313_v37 }
 0x187   : > { %1316 = vadd.xlane.f32.xlu0 %v1315_v39 }
 0x214   : > { %v1317_v40 = vpop.xlane.xlu0 %1316 }
 0x215   : > { %v1318_v41 = vrot.slane %v1317_v40, 4 }
 0x217   : > { %v1319_v42 = vadd.f32 %v1318_v41, %v1317_v40 }
 0x219   : > { %v1320_v8 = vrot.slane %v1319_v42, 2 }
 0x21b   : > { %v1321_v43 = vadd.f32 %v1320_v8, %v1319_v42 }
 0x21d   : > { %v1322_v6 = vrot.slane %v1321_v43, 1 }
 0x21f   : > { %v1323_v44 = vadd.f32 %v1322_v6, %v1321_v43 }
 0x221   : > { %1806 = vpush %v1323_v44 }
 0x252   : > { %s1807_s11 = spop %1806 }
 0x253   : > { %v1325_v7 = vstv %s1807_s11 }
 0x254   : > { %1326 = vst [vmem:[%s243_s10] sm:$0xff] %v1325_v7 }
 0x255 PF: > { %s15_s18 = sadd.s32 1, %s1840_s18  }
 0x256   : > { %p12_p5 = scmp.ge.s32.totalorder %s15_s18, 6  }
 0x258   :  { %14 = sbr.rel (!%p12_p5) target bundleno = 1 (0x1), region = 74 }

</bundles_post_ra>
